<compile_context>
chip_gen: v5e
topology: v5e:2x2
jax: 0.10.0
libtpu: 0.0.40
codegen_flags: <defaults>
</compile_context>

<pallas_src>
import functools

import jax
import jax.numpy as jnp
from jax.experimental import pallas as pl
from jax.experimental.pallas import tpu as pltpu


# -----------------------------------------------------------------------------
# Fused Pallas kernel: input extractors + fusion + requested output head
# -----------------------------------------------------------------------------
def _fused_forward_kernel(
    xg_ref,              # [tile_m, K_GENO]   flattened genotype tile
    xt_ref,              # [tile_m, K_TAB]    tabular tile
    wg_ref, bg_ref,      # [K_GENO, HIDDEN], [1, HIDDEN]
    wt_ref, bt_ref,      # [K_TAB,  HIDDEN], [1, HIDDEN]
    wfg_ref, wft_ref,    # [HIDDEN, FUSED] x 2
    bf_ref,              # [1, FUSED]
    wo_ref, bo_ref,      # [FUSED, N], [1, N]
    o_ref,               # [tile_m, N]
    *,
    precision,
):
    dot = functools.partial(
        jnp.dot, preferred_element_type=jnp.float32, precision=precision
    )

    # Input feature extractors (genotype and tabular branches).
    g = jnp.maximum(dot(xg_ref[...], wg_ref[...]) + bg_ref[...], 0.0)
    t = jnp.maximum(dot(xt_ref[...], wt_ref[...]) + bt_ref[...], 0.0)

    # Fusion module ("computed"): ReLU(g @ Wfg + t @ Wft + b).
    f = jnp.maximum(
        dot(g, wfg_ref[...]) + dot(t, wft_ref[...]) + bf_ref[...], 0.0
    )

    # Requested tabular output head only; narrow (N-lane) store, no padding.
    o_ref[...] = (dot(f, wo_ref[...]) + bo_ref[...]).astype(o_ref.dtype)


def fused_attribution_forward(
    x_geno_flat, x_tab, params, *, max_tile_m=1024, precision=None
):
    """Whole (input -> fusion -> requested output head) forward in one kernel.

    x_geno_flat: [M, K_GENO]
    x_tab:       [M, K_TAB]
    params:      dict of pre-packed parameters (biases already (1, n)).
    Returns [M, NUM_CLASSES] float32.
    """
    m, kg = x_geno_flat.shape
    kt = x_tab.shape[1]
    hidden = params["w_geno"].shape[1]
    fused = params["w_fuse_geno"].shape[1]
    n = params["w_out"].shape[1]

    # Batch tiling: weights stay resident; only M is tiled so big attribution
    # batches pipeline the input/output DMAs and can shard across TensorCores.
    if m <= max_tile_m:
        tile_m = m                      # block M dim == full array dim -> valid
        grid_m = 1
    else:
        tile_m = max_tile_m             # multiple of 8
        grid_m = pl.cdiv(m, tile_m)
        # Ragged final tile: Pallas clips the boundary block's HBM transfer to
        # the real M extent; rows are independent so the undefined padding rows
        # never contaminate valid output rows.

    # v7x has 2 TensorCores per chip: split the M grid across cores when there
    # is actually more than one tile.  Falls back to plain PARALLEL otherwise
    # (and on jax versions without CORE_PARALLEL).
    if grid_m >= 2:
        m_semantics = getattr(pltpu, "CORE_PARALLEL", pltpu.PARALLEL)
    else:
        m_semantics = pltpu.PARALLEL

    x_itemsize = jnp.dtype(x_geno_flat.dtype).itemsize
    w_bytes = sum(
        int(params[k].size) * jnp.dtype(params[k].dtype).itemsize
        for k in ("w_geno", "b_geno", "w_tab", "b_tab",
                  "w_fuse_geno", "w_fuse_tab", "b_fuse", "w_out", "b_out")
    )
    flops = 2 * m * (kg * hidden + kt * hidden + 2 * hidden * fused + fused * n)
    bytes_accessed = x_itemsize * m * (kg + kt) + w_bytes + 4 * m * n

    kernel = functools.partial(_fused_forward_kernel, precision=precision)

    return pl.pallas_call(
        kernel,
        out_shape=jax.ShapeDtypeStruct((m, n), jnp.float32),
        grid_spec=pltpu.PrefetchScalarGridSpec(
            num_scalar_prefetch=0,
            grid=(grid_m,),
            in_specs=[
                pl.BlockSpec((tile_m, kg), lambda i: (i, 0)),        # genotype tile
                pl.BlockSpec((tile_m, kt), lambda i: (i, 0)),        # tabular tile
                pl.BlockSpec((kg, hidden), lambda i: (0, 0)),        # resident weights
                pl.BlockSpec((1, hidden), lambda i: (0, 0)),
                pl.BlockSpec((kt, hidden), lambda i: (0, 0)),
                pl.BlockSpec((1, hidden), lambda i: (0, 0)),
                pl.BlockSpec((hidden, fused), lambda i: (0, 0)),
                pl.BlockSpec((hidden, fused), lambda i: (0, 0)),
                pl.BlockSpec((1, fused), lambda i: (0, 0)),
                pl.BlockSpec((fused, n), lambda i: (0, 0)),
                pl.BlockSpec((1, n), lambda i: (0, 0)),
            ],
            out_specs=pl.BlockSpec((tile_m, n), lambda i: (i, 0)),
        ),
        compiler_params=pltpu.CompilerParams(
            dimension_semantics=(m_semantics,),
        ),
        cost_estimate=pl.CostEstimate(
            flops=flops, transcendentals=0, bytes_accessed=int(bytes_accessed)
        ),
    )(
        x_geno_flat, x_tab,
        params["w_geno"], params["b_geno"],
        params["w_tab"], params["b_tab"],
        params["w_fuse_geno"], params["w_fuse_tab"], params["b_fuse"],
        params["w_out"], params["b_out"],
    )


# -----------------------------------------------------------------------------
# Synthetic wrapped meta-model + wrapper (JAX re-implementation of nn.Module)
# -----------------------------------------------------------------------------
class WrappedModel:
    """Deterministic synthetic stand-in for the EIR meta-model.

    Feature extractors, fusion and the requested tabular output head execute
    as a single fused Pallas kernel; parameters are packed (bias reshape +
    optional bf16 cast) once at construction time.
    """

    def __init__(self, raw_params, num_classes, *, param_dtype=jnp.float32,
                 precision=None):
        self.param_dtype = param_dtype
        self.precision = precision
        self.num_classes = num_classes

        def w(x):
            return jnp.asarray(x, dtype=param_dtype)

        hidden = raw_params["w_geno"].shape[1]
        fused = raw_params["w_fuse_geno"].shape[1]

        self.packed = {
            "w_geno": w(raw_params["w_geno"]),
            "b_geno": jnp.asarray(raw_params["b_geno"], jnp.float32).reshape(1, hidden),
            "w_tab": w(raw_params["w_tab"]),
            "b_tab": jnp.asarray(raw_params["b_tab"], jnp.float32).reshape(1, hidden),
            "w_fuse_geno": w(raw_params["w_fuse_geno"]),
            "w_fuse_tab": w(raw_params["w_fuse_tab"]),
            "b_fuse": jnp.asarray(raw_params["b_fuse"], jnp.float32).reshape(1, fused),
            "w_out": w(raw_params["w_out"]),
            "b_out": jnp.asarray(raw_params["b_out"], jnp.float32).reshape(1, num_classes),
        }

        # Metadata mirroring the EIR meta-model structure.
        self.input_module_names = ("genotype", "tabular")
        self.fusion_to_output_mapping = {"target_output": "computed"}
        self.output_columns = {"target_output": ("column_a",)}

    def run_output_module(self, inputs_matched, output_name):
        """Feature extraction + fusion + ONLY the requested output module,
        fused into one Pallas kernel call.  Returns {column_name: logits}."""
        assert output_name in self.fusion_to_output_mapping
        x_geno = inputs_matched["genotype"]
        x_tab = inputs_matched["tabular"]
        m = x_geno.shape[0]
        # Flatten only (free, contiguous reshape); no concatenate, no extra
        # HBM pass — the two inputs go into the kernel as separate operands.
        x_geno_flat = x_geno.reshape(m, -1).astype(self.param_dtype)
        x_tab = x_tab.astype(self.param_dtype)
        logits = fused_attribution_forward(
            x_geno_flat, x_tab, self.packed, precision=self.precision
        )
        (column,) = self.output_columns[output_name]
        return {column: logits}


class WrapperModelForAttribution:
    """JAX/Pallas equivalent of the PyTorch WrapperModelForAttribution."""

    def __init__(self, wrapped_model, input_names, output_name, column_name):
        self.wrapped_model = wrapped_model
        self.input_names = list(input_names)
        self.output_name = output_name
        self.column_name = column_name

    def match_tuple_inputs_and_names(self, input_sequence):
        matched = {
            k: v
            for k, v in zip(self.input_names, input_sequence)
            if not k.startswith("__extras_")
        }
        return matched

    def __call__(self, *inputs):
        inputs_matched = self.match_tuple_inputs_and_names(input_sequence=inputs)
        model = self.wrapped_model

        # Only the fusion target feeding the requested output module is run
        # (mirrors the PyTorch forward, which skips unrelated output modules
        # such as diffusion / time-embedding heads).  Feature extraction,
        # fusion and the requested output head execute as ONE Pallas kernel.
        cur_fusion_target = model.fusion_to_output_mapping[self.output_name]
        assert cur_fusion_target in model.fusion_to_output_mapping.values()

        output_modules_out = {
            self.output_name: model.run_output_module(
                inputs_matched, output_name=self.output_name
            )
        }
        return output_modules_out[self.output_name][self.column_name]


# -----------------------------------------------------------------------------
# Main
# -----------------------------------------------------------------------------
if __name__ == "__main__":
    B, C, H, W = 2, 4, 4, 8          # genotype-like NCHW input -> flatten to 128
    TAB_DIM = 16
    HIDDEN = 32
    FUSED = 64
    NUM_CLASSES = 8

    key = jax.random.PRNGKey(0)
    k_in_g, k_in_t, k_in_e, k_p = jax.random.split(key, 4)

    # Inputs ("__extras_time" is intentionally dropped by the wrapper, mirroring
    # the PyTorch module's filtering of names starting with "__extras_").
    x_geno = jax.random.normal(k_in_g, (B, C, H, W), dtype=jnp.float32)
    x_tab = jax.random.normal(k_in_t, (B, TAB_DIM), dtype=jnp.float32)
    x_extras_time = jax.random.normal(k_in_e, (B, 4), dtype=jnp.float32)

    # Deterministic synthetic parameters (raw, per-module, PyTorch-style).
    pk = jax.random.split(k_p, 8)
    raw_params = {
        "w_geno": 0.05 * jax.random.normal(pk[0], (C * H * W, HIDDEN), jnp.float32),
        "b_geno": 0.01 * jnp.arange(HIDDEN, dtype=jnp.float32),
        "w_tab": 0.05 * jax.random.normal(pk[1], (TAB_DIM, HIDDEN), jnp.float32),
        "b_tab": 0.01 * jnp.arange(HIDDEN, dtype=jnp.float32),
        "w_fuse_geno": 0.05 * jax.random.normal(pk[2], (HIDDEN, FUSED), jnp.float32),
        "w_fuse_tab": 0.05 * jax.random.normal(pk[3], (HIDDEN, FUSED), jnp.float32),
        "b_fuse": 0.01 * jnp.arange(FUSED, dtype=jnp.float32),
        "w_out": 0.05 * jax.random.normal(pk[4], (FUSED, NUM_CLASSES), jnp.float32),
        "b_out": 0.01 * jnp.arange(NUM_CLASSES, dtype=jnp.float32),
    }

    # param_dtype=jnp.bfloat16 halves HBM input traffic (kernel is mem-bound);
    # precision=jax.lax.Precision.HIGHEST gives full-f32 MXU passes for
    # attribution fidelity.  Defaults keep f32 params / backend-default matmul
    # precision so the check below stays tight.
    wrapped = WrappedModel(raw_params, num_classes=NUM_CLASSES)
    wrapper = WrapperModelForAttribution(
        wrapped_model=wrapped,
        input_names=["genotype", "tabular", "__extras_time"],
        output_name="target_output",
        column_name="column_a",
    )

    out = wrapper(x_geno, x_tab, x_extras_time)
    out = jax.block_until_ready(out)

    # Pure-JAX reference of the ORIGINAL per-module forward, validating the
    # fused kernel end to end.
    def ref_forward():
        g = jnp.maximum(
            x_geno.reshape(B, -1) @ raw_params["w_geno"] + raw_params["b_geno"], 0.0
        )
        t = jnp.maximum(x_tab @ raw_params["w_tab"] + raw_params["b_tab"], 0.0)
        f = jnp.maximum(
            g @ raw_params["w_fuse_geno"]
            + t @ raw_params["w_fuse_tab"]
            + raw_params["b_fuse"],
            0.0,
        )
        return f @ raw_params["w_out"] + raw_params["b_out"]

    ref = ref_forward()
    assert out.shape == (B, NUM_CLASSES)
    # Tolerance covers TPU default (bf16-operand) matmul precision, which both
    # the kernel and the reference use; structure (per-branch dots) is identical.
    assert jnp.allclose(out, ref, atol=2e-3, rtol=2e-3)

    print("KERNEL_OK")
</pallas_src>

<mosaic_0001>
module attributes {stable_mosaic.version = 11 : i64} {
  func.func @_fused_forward_kernel(%arg0: i32, %arg1: memref<2x128xf32, #tpu.memory_space<vmem>>, %arg2: memref<2x16xf32, #tpu.memory_space<vmem>>, %arg3: memref<128x32xf32, #tpu.memory_space<vmem>>, %arg4: memref<1x32xf32, #tpu.memory_space<vmem>>, %arg5: memref<16x32xf32, #tpu.memory_space<vmem>>, %arg6: memref<1x32xf32, #tpu.memory_space<vmem>>, %arg7: memref<32x64xf32, #tpu.memory_space<vmem>>, %arg8: memref<32x64xf32, #tpu.memory_space<vmem>>, %arg9: memref<1x64xf32, #tpu.memory_space<vmem>>, %arg10: memref<64x8xf32, #tpu.memory_space<vmem>>, %arg11: memref<1x8xf32, #tpu.memory_space<vmem>>, %arg12: memref<2x8xf32, #tpu.memory_space<vmem>>) attributes {dimension_semantics = [#tpu.dimension_semantics<parallel>], iteration_bounds = array<i64: 1>, scalar_prefetch = 0 : i64, scratch_operands = 0 : i64, tpu.core_type = #tpu.core_type<tc>, window_params = [{transform_indices = @transform_0, window_bounds = array<i64: 2, 128>}, {transform_indices = @transform_1, window_bounds = array<i64: 2, 16>}, {pipeline_mode = #tpu.pipeline_mode<synchronous>, transform_indices = @transform_2, window_bounds = array<i64: 128, 32>}, {pipeline_mode = #tpu.pipeline_mode<synchronous>, transform_indices = @transform_3, window_bounds = array<i64: 1, 32>}, {pipeline_mode = #tpu.pipeline_mode<synchronous>, transform_indices = @transform_4, window_bounds = array<i64: 16, 32>}, {pipeline_mode = #tpu.pipeline_mode<synchronous>, transform_indices = @transform_5, window_bounds = array<i64: 1, 32>}, {pipeline_mode = #tpu.pipeline_mode<synchronous>, transform_indices = @transform_6, window_bounds = array<i64: 32, 64>}, {pipeline_mode = #tpu.pipeline_mode<synchronous>, transform_indices = @transform_7, window_bounds = array<i64: 32, 64>}, {pipeline_mode = #tpu.pipeline_mode<synchronous>, transform_indices = @transform_8, window_bounds = array<i64: 1, 64>}, {pipeline_mode = #tpu.pipeline_mode<synchronous>, transform_indices = @transform_9, window_bounds = array<i64: 64, 8>}, {pipeline_mode = #tpu.pipeline_mode<synchronous>, transform_indices = @transform_10, window_bounds = array<i64: 1, 8>}, {transform_indices = @transform_11, window_bounds = array<i64: 2, 8>}]} {
    %c0 = arith.constant 0 : index
    %c0_0 = arith.constant 0 : index
    %0 = vector.load %arg1[%c0, %c0_0] : memref<2x128xf32, #tpu.memory_space<vmem>>, vector<2x128xf32>
    %c0_1 = arith.constant 0 : index
    %c0_2 = arith.constant 0 : index
    %1 = vector.load %arg3[%c0_1, %c0_2] : memref<128x32xf32, #tpu.memory_space<vmem>>, vector<128x32xf32>
    %cst = arith.constant dense<0.000000e+00> : vector<2x32xf32>
    %2 = tpu.matmul %0, %1, %cst {dimension_numbers = #tpu.dot_dimension_numbers<[1], [0], [0], [1], [0, 0, 1, 1], [], []>} : vector<2x128xf32>, vector<128x32xf32>, vector<2x32xf32> -> vector<2x32xf32>
    %c0_3 = arith.constant 0 : index
    %c0_4 = arith.constant 0 : index
    %3 = vector.load %arg4[%c0_3, %c0_4] : memref<1x32xf32, #tpu.memory_space<vmem>>, vector<1x32xf32>
    %4 = vector.broadcast %3 : vector<1x32xf32> to vector<2x32xf32>
    %5 = arith.addf %2, %4 : vector<2x32xf32>
    %cst_5 = arith.constant 0.000000e+00 : f32
    %6 = vector.broadcast %cst_5 : f32 to vector<2x32xf32>
    %7 = arith.maximumf %5, %6 : vector<2x32xf32>
    %c0_6 = arith.constant 0 : index
    %c0_7 = arith.constant 0 : index
    %8 = vector.load %arg2[%c0_6, %c0_7] : memref<2x16xf32, #tpu.memory_space<vmem>>, vector<2x16xf32>
    %c0_8 = arith.constant 0 : index
    %c0_9 = arith.constant 0 : index
    %9 = vector.load %arg5[%c0_8, %c0_9] : memref<16x32xf32, #tpu.memory_space<vmem>>, vector<16x32xf32>
    %cst_10 = arith.constant dense<0.000000e+00> : vector<2x32xf32>
    %10 = tpu.matmul %8, %9, %cst_10 {dimension_numbers = #tpu.dot_dimension_numbers<[1], [0], [0], [1], [0, 0, 1, 1], [], []>} : vector<2x16xf32>, vector<16x32xf32>, vector<2x32xf32> -> vector<2x32xf32>
    %c0_11 = arith.constant 0 : index
    %c0_12 = arith.constant 0 : index
    %11 = vector.load %arg6[%c0_11, %c0_12] : memref<1x32xf32, #tpu.memory_space<vmem>>, vector<1x32xf32>
    %12 = vector.broadcast %11 : vector<1x32xf32> to vector<2x32xf32>
    %13 = arith.addf %10, %12 : vector<2x32xf32>
    %cst_13 = arith.constant 0.000000e+00 : f32
    %14 = vector.broadcast %cst_13 : f32 to vector<2x32xf32>
    %15 = arith.maximumf %13, %14 : vector<2x32xf32>
    %c0_14 = arith.constant 0 : index
    %c0_15 = arith.constant 0 : index
    %16 = vector.load %arg7[%c0_14, %c0_15] : memref<32x64xf32, #tpu.memory_space<vmem>>, vector<32x64xf32>
    %cst_16 = arith.constant dense<0.000000e+00> : vector<2x64xf32>
    %17 = tpu.matmul %7, %16, %cst_16 {dimension_numbers = #tpu.dot_dimension_numbers<[1], [0], [0], [1], [0, 0, 1, 1], [], []>} : vector<2x32xf32>, vector<32x64xf32>, vector<2x64xf32> -> vector<2x64xf32>
    %c0_17 = arith.constant 0 : index
    %c0_18 = arith.constant 0 : index
    %18 = vector.load %arg8[%c0_17, %c0_18] : memref<32x64xf32, #tpu.memory_space<vmem>>, vector<32x64xf32>
    %cst_19 = arith.constant dense<0.000000e+00> : vector<2x64xf32>
    %19 = tpu.matmul %15, %18, %cst_19 {dimension_numbers = #tpu.dot_dimension_numbers<[1], [0], [0], [1], [0, 0, 1, 1], [], []>} : vector<2x32xf32>, vector<32x64xf32>, vector<2x64xf32> -> vector<2x64xf32>
    %20 = arith.addf %17, %19 : vector<2x64xf32>
    %c0_20 = arith.constant 0 : index
    %c0_21 = arith.constant 0 : index
    %21 = vector.load %arg9[%c0_20, %c0_21] : memref<1x64xf32, #tpu.memory_space<vmem>>, vector<1x64xf32>
    %22 = vector.broadcast %21 : vector<1x64xf32> to vector<2x64xf32>
    %23 = arith.addf %20, %22 : vector<2x64xf32>
    %cst_22 = arith.constant 0.000000e+00 : f32
    %24 = vector.broadcast %cst_22 : f32 to vector<2x64xf32>
    %25 = arith.maximumf %23, %24 : vector<2x64xf32>
    %c0_23 = arith.constant 0 : index
    %c0_24 = arith.constant 0 : index
    %26 = vector.load %arg10[%c0_23, %c0_24] : memref<64x8xf32, #tpu.memory_space<vmem>>, vector<64x8xf32>
    %cst_25 = arith.constant dense<0.000000e+00> : vector<2x8xf32>
    %27 = tpu.matmul %25, %26, %cst_25 {dimension_numbers = #tpu.dot_dimension_numbers<[1], [0], [0], [1], [0, 0, 1, 1], [], []>} : vector<2x64xf32>, vector<64x8xf32>, vector<2x8xf32> -> vector<2x8xf32>
    %c0_26 = arith.constant 0 : index
    %c0_27 = arith.constant 0 : index
    %28 = vector.load %arg11[%c0_26, %c0_27] : memref<1x8xf32, #tpu.memory_space<vmem>>, vector<1x8xf32>
    %29 = vector.broadcast %28 : vector<1x8xf32> to vector<2x8xf32>
    %30 = arith.addf %27, %29 : vector<2x8xf32>
    %c0_28 = arith.constant 0 : index
    %c0_29 = arith.constant 0 : index
    %31 = vector.load %arg12[%c0_28, %c0_29] : memref<2x8xf32, #tpu.memory_space<vmem>>, vector<2x8xf32>
    tpu.vector_store %arg12[%c0_28, %c0_29], %30 {strides = array<i32>} : memref<2x8xf32, #tpu.memory_space<vmem>>, vector<2x8xf32>,
    return
  }
  func.func @transform_0(%arg0: i32) -> (i32, i32) {
    %c0_i32 = arith.constant 0 : i32
    %c0_i32_0 = arith.constant 0 : i32
    return %arg0, %c0_i32 : i32, i32
  }
  func.func @transform_1(%arg0: i32) -> (i32, i32) {
    %c0_i32 = arith.constant 0 : i32
    %c0_i32_0 = arith.constant 0 : i32
    return %arg0, %c0_i32 : i32, i32
  }
  func.func @transform_2(%arg0: i32) -> (i32, i32) {
    %c0_i32 = arith.constant 0 : i32
    %c0_i32_0 = arith.constant 0 : i32
    %c0_i32_1 = arith.constant 0 : i32
    return %c0_i32, %c0_i32_0 : i32, i32
  }
  func.func @transform_3(%arg0: i32) -> (i32, i32) {
    %c0_i32 = arith.constant 0 : i32
    %c0_i32_0 = arith.constant 0 : i32
    %c0_i32_1 = arith.constant 0 : i32
    return %c0_i32, %c0_i32_0 : i32, i32
  }
  func.func @transform_4(%arg0: i32) -> (i32, i32) {
    %c0_i32 = arith.constant 0 : i32
    %c0_i32_0 = arith.constant 0 : i32
    %c0_i32_1 = arith.constant 0 : i32
    return %c0_i32, %c0_i32_0 : i32, i32
  }
  func.func @transform_5(%arg0: i32) -> (i32, i32) {
    %c0_i32 = arith.constant 0 : i32
    %c0_i32_0 = arith.constant 0 : i32
    %c0_i32_1 = arith.constant 0 : i32
    return %c0_i32, %c0_i32_0 : i32, i32
  }
  func.func @transform_6(%arg0: i32) -> (i32, i32) {
    %c0_i32 = arith.constant 0 : i32
    %c0_i32_0 = arith.constant 0 : i32
    %c0_i32_1 = arith.constant 0 : i32
    return %c0_i32, %c0_i32_0 : i32, i32
  }
  func.func @transform_7(%arg0: i32) -> (i32, i32) {
    %c0_i32 = arith.constant 0 : i32
    %c0_i32_0 = arith.constant 0 : i32
    %c0_i32_1 = arith.constant 0 : i32
    return %c0_i32, %c0_i32_0 : i32, i32
  }
  func.func @transform_8(%arg0: i32) -> (i32, i32) {
    %c0_i32 = arith.constant 0 : i32
    %c0_i32_0 = arith.constant 0 : i32
    %c0_i32_1 = arith.constant 0 : i32
    return %c0_i32, %c0_i32_0 : i32, i32
  }
  func.func @transform_9(%arg0: i32) -> (i32, i32) {
    %c0_i32 = arith.constant 0 : i32
    %c0_i32_0 = arith.constant 0 : i32
    %c0_i32_1 = arith.constant 0 : i32
    return %c0_i32, %c0_i32_0 : i32, i32
  }
  func.func @transform_10(%arg0: i32) -> (i32, i32) {
    %c0_i32 = arith.constant 0 : i32
    %c0_i32_0 = arith.constant 0 : i32
    %c0_i32_1 = arith.constant 0 : i32
    return %c0_i32, %c0_i32_0 : i32, i32
  }
  func.func @transform_11(%arg0: i32) -> (i32, i32) {
    %c0_i32 = arith.constant 0 : i32
    %c0_i32_0 = arith.constant 0 : i32
    return %arg0, %c0_i32 : i32, i32
  }
}

</mosaic_0001>

<bundles_post_ra>
// kernel: tpu_custom_call.1
= control target key start
LH: loop header
LB: loop body
LE: loop exit
PB: predicated region body
PF: predicated region fallthrough
CT: control target
= control target key end

     0   :  { %vm88_vm0 = vcmask 130048   ;;  %s447_s0 = inlined_call_operand.vmem [shape: f32[2,128], index: 0, kind: input, shape index: {}]   ;;  %s448_s1 = inlined_call_operand.vmem [shape: f32[2,16], index: 1, kind: input, shape index: {}]   ;;  %s449_s2 = inlined_call_operand.vmem [shape: f32[128,32], index: 2, kind: input, shape index: {}]   ;;  %s450_s3 = inlined_call_operand.vmem [shape: f32[1,32], index: 3, kind: input, shape index: {}]   ;;  %s451_s4 = inlined_call_operand.vmem [shape: f32[16,32], index: 4, kind: input, shape index: {}]   ;;  %s452_s5 = inlined_call_operand.vmem [shape: f32[1,32], index: 5, kind: input, shape index: {}]   ;;  %s453_s6 = inlined_call_operand.vmem [shape: f32[32,64], index: 6, kind: input, shape index: {}]   ;;  %s454_s7 = inlined_call_operand.vmem [shape: f32[32,64], index: 7, kind: input, shape index: {}]   ;;  %s455_s8 = inlined_call_operand.vmem [shape: f32[1,64], index: 8, kind: input, shape index: {}]   ;;  %s456_s9 = inlined_call_operand.vmem [shape: f32[64,8], index: 9, kind: input, shape index: {}]   ;;  %s457_s10 = inlined_call_operand.vmem [shape: f32[1,8], index: 10, kind: input, shape index: {}]   ;;  %s458_s11 = inlined_call_operand.hbm [shape: f32[2,8], index: 11, kind: output, shape index: {}]  }
   0x1   :  { %v55_v0 = vld [vmem:[%s449_s2 + $0x78] sm:$0xff]  ;;  %v54_v1 = vld [vmem:[%s449_s2 + $0x70] sm:$0xff]  ;;  %v53_v2 = vld [vmem:[%s449_s2 + $0x68] sm:$0xff] }
   0x2   :  { %60 = vmatpush.msra.mxu0 %v55_v0  ;;  %v52_v3 = vld [vmem:[%s449_s2 + $0x60] sm:$0xff]  ;;  %v83_v4 = vld [vmem:[%s451_s4 + $0x8] sm:$0xff]  ;;  %v51_v6 = vld [vmem:[%s449_s2 + $0x58] sm:$0xff] }
   0x3   :  { %v82_v5 = vld [vmem:[%s451_s4] sm:$0xff]  ;;  %106 = vmatpush.msra.mxu1 %v83_v4  ;;  %v120_v8 = vld [vmem:[%s454_s7 + $0x18] sm:$0xff]  ;;  %v50_v9 = vld [vmem:[%s449_s2 + $0x50] sm:$0xff] }
   0x4   :  { %61 = vmatpush.msra.mxu0 %v54_v1  ;;  %v81_v7 = vld [vmem:[%s448_s1] sm:$0x3]  ;;  %137 = vmatpush.msra.mxu2 %v120_v8  ;;  %v116_v10 = vld [vmem:[%s453_s6 + $0x18] sm:$0xff] }
   0x5   :  { %107 = vmatpush.msra.mxu1 %v82_v5  ;;  %160 = vmatpush.msra.mxu3 %v116_v10 }
   0x6   :  { %62 = vmatpush.msra.mxu0 %v53_v2  ;;  %228 = vmatmul.msk.f32.vlgmr.msra.gmra.mxu1 %vm88_vm0, %v81_v7 }
   0x8   :  { %63 = vmatpush.msra.mxu0 %v52_v3 }
   0xa   :  { %64 = vmatpush.msra.mxu0 %v51_v6 }
   0xb   :  { %16 = vsyncpa [#allocation3], 0  ;;  %v49_v11 = vld [vmem:[%s449_s2 + $0x48] sm:$0xff]  ;;  %v48_v12 = vld [vmem:[%s449_s2 + $0x40] sm:$0xff]  ;;  %vm121_vm1 = vcmask 261120   ;;  %vm186_vm2 = vcmask 523264  }
   0xc   :  { %65 = vmatpush.msra.mxu0 %v50_v9  ;;  %v47_v13 = vld [vmem:[%s449_s2 + $0x38] sm:$0xff]  ;;  %v46_v14 = vld [vmem:[%s449_s2 + $0x30] sm:$0xff]  ;;  %v45_v15 = vld [vmem:[%s449_s2 + $0x28] sm:$0xff]  ;;  %s263_s26 = smov [#allocation2]   ;;  %s219_s29 = sshll.u32 %s458_s11, 4  ;;  %vm210_vm3 = vcmask 58368   ;;  %s220_s29 = int_to_ptr.hbm [resolvable:$true] %s219_s29 }
   0xd   :  { %v44_v16 = vld [vmem:[%s449_s2 + $0x20] sm:$0xff]  ;;  %v43_v17 = vld [vmem:[%s449_s2 + $0x18] sm:$0xff]  ;;  %v42_v18 = vld [vmem:[%s449_s2 + $0x10] sm:$0xff]  ;;  %s217_s27 = sshll.u32 %s263_s26, 4  ;;  %s218_s27 = int_to_ptr.vmem [resolvable:$true] %s217_s27 }
   0xe   :  { %66 = vmatpush.msra.mxu0 %v49_v11  ;;  %v41_v19 = vld [vmem:[%s449_s2 + $0x8] sm:$0xff]  ;;  %v40_v20 = vld [vmem:[%s449_s2] sm:$0xff]  ;;  %v119_v22 = vld [vmem:[%s454_s7 + $0x10] sm:$0xff] }
   0xf   :  { %v39_v21 = vld [vmem:[%s447_s0] sm:$0x3]  ;;  %v115_v23 = vld [vmem:[%s453_s6 + $0x10] sm:$0xff]  ;;  %138 = vmatpush.msra.mxu2 %v119_v22  ;;  %v118_v24 = vld [vmem:[%s454_s7 + $0x8] sm:$0xff] }
  0x10   :  { %67 = vmatpush.msra.mxu0 %v48_v12  ;;  %161 = vmatpush.msra.mxu3 %v115_v23  ;;  %v114_v25 = vld [vmem:[%s453_s6 + $0x8] sm:$0xff]  ;;  %v117_v26 = vld [vmem:[%s454_s7] sm:$0xff]  ;;  %v181_v28 = vld [vmem:[%s456_s9 + $0x38] sm:$0xff] }
  0x11   :  { %139 = vmatpush.msra.mxu2 %v118_v24  ;;  %v113_v27 = vld [vmem:[%s453_s6] sm:$0xff]  ;;  %v180_v29 = vld [vmem:[%s456_s9 + $0x30] sm:$0xff]  ;;  %198 = vmatpush.msrb.mxu1 %v181_v28  ;;  %v179_v31 = vld [vmem:[%s456_s9 + $0x28] sm:$0xff] }
  0x12   :  { %68 = vmatpush.msra.mxu0 %v47_v13  ;;  %162 = vmatpush.msra.mxu3 %v114_v25  ;;  %v234_v30 = vld [vmem:[%s452_s5] ss:$0 sm:$0xff]  ;;  %v177_v40 = vld [vmem:[%s456_s9 + $0x18] sm:$0xff]  ;;  %v176_v41 = vld [vmem:[%s456_s9 + $0x10] sm:$0xff] }
  0x13   :  { %140 = vmatpush.msra.mxu2 %v117_v26  ;;  %199 = vmatpush.msrb.mxu1 %v180_v29  ;;  %v178_v33 = vld [vmem:[%s456_s9 + $0x20] sm:$0xff]  ;;  %v175_v42 = vld [vmem:[%s456_s9 + $0x8] sm:$0xff] }
  0x14   :  { %69 = vmatpush.msra.mxu0 %v46_v14  ;;  %163 = vmatpush.msra.mxu3 %v113_v27  ;;  %v233_v36 = vld [vmem:[%s450_s3] ss:$0 sm:$0xff] }
  0x15   :  { %200 = vmatpush.msrb.mxu1 %v179_v31  ;;  %v174_v43 = vld [vmem:[%s456_s9] sm:$0xff] }
  0x16   :  { %70 = vmatpush.msra.mxu0 %v45_v15  ;;  %v235_v45 = vld [vmem:[%s455_s8] ss:$0 sm:$0xff] }
  0x17   :  { %201 = vmatpush.msrb.mxu1 %v178_v33  ;;  %v236_v50 = vld [vmem:[%s457_s10] ss:$0 sm:$0xff] }
  0x18   :  { %71 = vmatpush.msra.mxu0 %v44_v16 }
  0x19   :  { %202 = vmatpush.msrb.mxu1 %v177_v40 }
  0x1a   :  { %72 = vmatpush.msra.mxu0 %v43_v17 }
  0x1b   :  { %203 = vmatpush.msrb.mxu1 %v176_v41 }
  0x1c   :  { %73 = vmatpush.msra.mxu0 %v42_v18 }
  0x1d   :  { %204 = vmatpush.msrb.mxu1 %v175_v42 }
  0x1e   :  { %74 = vmatpush.msra.mxu0 %v41_v19 }
  0x1f   :  { %205 = vmatpush.msrb.mxu1 %v174_v43 }
  0x20   :  { %75 = vmatpush.msra.mxu0 %v40_v20 }
  0x21   :  { %76 = vmatmul.f32.vlgmr.msra.gmra.mxu0 %v39_v21 }
  0x83   :  { %v109_v32 = vpop.f32.mrf.mxu1 }
  0x84   :  { %v110_v34 = vadd.f32 %v234_v30, %v109_v32 }
  0x86   :  { %v112_v35 = vmax.f32 %v110_v34, 0.0 }
  0x88   :  { %229 = vmatmul.msk.f32.vlgmr.msra.gmra.mxu2 %vm121_vm1, %v112_v35 }
  0x9e   :  { %v77_v37 = vpop.f32.mrf.mxu0 }
  0x9f   :  { %v78_v38 = vadd.f32 %v233_v36, %v77_v37 }
  0xa1   :  { %v80_v39 = vmax.f32 %v78_v38, 0.0 }
  0xa3   :  { %230 = vmatmul.msk.f32.vlgmr.msra.gmra.mxu3 %vm121_vm1, %v80_v39 }
 0x10b   :  { %v142_v44 = vpop.f32.mrf.mxu2 }
 0x126   :  { %v165_v46 = vpop.f32.mrf.mxu3 }
 0x127   :  { %v166_v47 = vadd.f32 %v165_v46, %v142_v44 }
 0x129   :  { %v172_v48 = vadd.f32 %v235_v45, %v166_v47 }
 0x12b   :  { %v173_v49 = vmax.f32 %v172_v48, 0.0 }
 0x12d   :  { %231 = vmatmul.msk.f32.vlgmr.msrb.gmra.mxu1 %vm186_vm2, %v173_v49 }
 0x1aa   :  { %v207_v51 = vpop.f32.mrf.mxu1 }
 0x1ab   :  { %v208_v52 = vadd.f32 %v236_v50, %v207_v51 }
 0x1ad   :  { %211 = vst.msk [vmem:[#allocation2] sm:$0x3] %vm210_vm3, %v208_v52 }
 0x1ae   :  { %222 = dma.vmem_to_hbm [thread:$0]  %s218_s27, 32, %s220_s29, [#allocation3]  }
 0x1af   :  { %261 = dma.done.wait [#allocation3], 32  }
 0x1b0   :  { %262 = vsyncadd [#allocation3], 4294967264 }
 0x1b1   :  { %227 = vsyncpa [#allocation3], 1 }

</bundles_post_ra>
